<compile_context>
chip_gen: v7x
topology: tpu7x:2x2x1
jax: 0.10.0
libtpu: 0.0.40
codegen_flags: <defaults>
</compile_context>

<pallas_src>
import jax
import jax.numpy as jnp
from jax.experimental import pallas as pl
from jax.experimental.pallas import tpu as pltpu


def _attention_kernel(x_ref, w_ref, b_ref, v_ref, out_ref, a_ref):
    # x_ref:   (BB, T, F)   block of batch elements, native dtype
    # w_ref:   (F, D)
    # b_ref:   (T, D)
    # v_ref:   (1, D)       V passed as a lane-dense row
    # out_ref: (BB, Fp)     pooled output, Fp = roundup(F, 128) (lane-dense store)
    # a_ref:   (BB, Tp)     attention weights (f32), Tp = roundup(T, 128)
    bb, t, f = x_ref.shape
    d = w_ref.shape[1]
    fp = out_ref.shape[-1]
    tp = a_ref.shape[-1]

    x = x_ref[...]  # keep native dtype; MXU accumulates in f32 anyway

    # ---- e = tanh(x @ W + b): one MXU matmul with M = BB*T ----
    # (BB, T, F) -> (BB*T, F) is a free re-view only when T is a multiple of the
    # sublane packing for x's dtype (8 for 32-bit, 16 for 16-bit, 32 for 8-bit);
    # otherwise express it as a rank-3 contraction to avoid a hidden VMEM copy.
    pack = 32 // jnp.dtype(x.dtype).itemsize
    if t % pack == 0:
        xw = jnp.dot(
            x.reshape(bb * t, f), w_ref[...],
            preferred_element_type=jnp.float32,
            precision=jax.lax.Precision.HIGHEST,
        ).reshape(bb, t, d)
    else:
        xw = jnp.einsum(
            'btf,fd->btd', x, w_ref[...],
            preferred_element_type=jnp.float32,
            precision=jax.lax.Precision.HIGHEST,
        )
    e = jnp.tanh(xw + b_ref[...].astype(jnp.float32)[None, :, :])      # (BB, T, D)

    # ---- scores = e @ V as VPU multiply + lane reduce ----
    v = v_ref[...].astype(jnp.float32).reshape(1, 1, d)
    s = jnp.sum(e * v, axis=-1)                                        # (BB, T)

    # ---- softmax over T (per batch row), stable, exact division (1e-5 tol) ----
    s_max = jnp.max(s, axis=-1, keepdims=True)                         # (BB, 1)
    p = jnp.exp(s - s_max)                                             # (BB, T)
    a = p / jnp.sum(p, axis=-1, keepdims=True)                         # (BB, T), f32

    # ---- output = sum_T (x * a) ----
    if t <= 128:
        # VPU multiply + sublane reduce: MXU would see BB matmuls with M=1.
        out = jnp.sum(x * a[:, :, None], axis=1)                       # (BB, F) f32
    else:
        out = jnp.einsum('bt,btf->bf', a, x,
                         preferred_element_type=jnp.float32,
                         precision=jax.lax.Precision.HIGHEST)          # (BB, F) f32

    # ---- lane-dense, full-width stores (pad columns up to the 128-lane slab) ----
    if fp > f:
        out = jnp.concatenate(
            [out, jnp.zeros((bb, fp - f), out.dtype)], axis=-1)
    if tp > t:
        a = jnp.concatenate(
            [a, jnp.zeros((bb, tp - t), a.dtype)], axis=-1)

    out_ref[...] = out.astype(out_ref.dtype)
    a_ref[...] = a.astype(a_ref.dtype)


def _pick_block_b(B, T, F, D, x_itemsize, *, target_steps=8, vmem_budget=24 << 20):
    """Batch elements per grid step: multiple of 8, ~target_steps grid steps,
    capped so the per-step footprint fits a v7x-safe VMEM budget."""
    Fp = pl.cdiv(F, 128) * 128
    Tp = pl.cdiv(T, 128) * 128
    per_elem = (
        2 * T * F * x_itemsize            # double-buffered x block (native dtype)
        + 3 * T * D * 4                   # xw / e f32 temporaries (with headroom)
        + 2 * (Fp * x_itemsize + Tp * 4)  # double-buffered lane-dense output slabs
    )
    max_bb = max(8, (vmem_budget // max(per_elem, 1)) // 8 * 8)
    bb = pl.cdiv(pl.cdiv(B, target_steps), 8) * 8     # ~target_steps steps, mult of 8
    bb = max(8, bb)
    return int(min(bb, max_bb))


def attention_forward(x, W, b, V, *, block_b=None):
    """Pallas implementation of Attention.forward (return_sequences=False).

    Args:
      x: (B, T, F) input.
      W: (F, D), b: (T, D), V: (D, 1) parameters as in Attention.build().
      block_b: batch elements per grid step (default: auto heuristic).

    Returns:
      (output, a) with output: (B, F) in x.dtype and a: (B, T, 1) in float32.
    """
    B, T, F = x.shape
    D = W.shape[1]
    x_itemsize = jnp.dtype(x.dtype).itemsize

    if block_b is None:
        block_b = _pick_block_b(B, T, F, D, x_itemsize)
    block_b = max(8, (int(block_b) // 8) * 8)

    # Pad the batch so the grid divides evenly; padded rows are sliced off.
    Bp = pl.cdiv(B, block_b) * block_b
    if Bp != B:
        x = jnp.pad(x, ((0, Bp - B), (0, 0), (0, 0)))

    # Lane-dense output slabs (full-width stores); sliced back below.
    Fp = pl.cdiv(F, 128) * 128
    Tp = pl.cdiv(T, 128) * 128

    v_row = V.reshape(1, D)  # lane-dense layout for the V projection

    flops = 2 * Bp * T * F * D + 2 * Bp * T * D + 2 * Bp * T * F
    transcendentals = Bp * T * D + Bp * T
    bytes_accessed = (
        Bp * T * F * x_itemsize
        + F * D * W.dtype.itemsize
        + T * D * b.dtype.itemsize
        + D * V.dtype.itemsize
        + Bp * Fp * x_itemsize
        + Bp * Tp * 4
    )

    # NOTE: W / b / V have constant index_maps (fetched once); a pipeline_mode of
    # pl.Buffered(1) would reclaim their second buffer on VMEM-tight v7x configs,
    # but they are small relative to the x block so the default is kept here.
    out, a = pl.pallas_call(
        _attention_kernel,
        out_shape=(
            jax.ShapeDtypeStruct((Bp, Fp), x.dtype),      # pooled output slab
            jax.ShapeDtypeStruct((Bp, Tp), jnp.float32),  # attention weights (f32)
        ),
        grid_spec=pltpu.PrefetchScalarGridSpec(
            num_scalar_prefetch=0,
            grid=(Bp // block_b,),
            in_specs=[
                pl.BlockSpec((block_b, T, F), lambda i: (i, 0, 0)),  # x block
                pl.BlockSpec((F, D), lambda i: (0, 0)),              # W (full)
                pl.BlockSpec((T, D), lambda i: (0, 0)),              # b (full)
                pl.BlockSpec((1, D), lambda i: (0, 0)),              # V row (full)
            ],
            out_specs=[
                pl.BlockSpec((block_b, Fp), lambda i: (i, 0)),
                pl.BlockSpec((block_b, Tp), lambda i: (i, 0)),
            ],
        ),
        compiler_params=pltpu.CompilerParams(
            dimension_semantics=("parallel",),
            # Above the 16/32 MiB scoped defaults, below every generation's
            # physical VMEM (v7x: 64 MiB); block sizing targets ~24 MiB.
            vmem_limit_bytes=48 * 1024 * 1024,
        ),
        cost_estimate=pl.CostEstimate(
            flops=int(flops),
            transcendentals=int(transcendentals),
            bytes_accessed=int(bytes_accessed),
        ),
    )(x, W, b, v_row)

    out = out[:B, :F]
    a = a[:B, :T].reshape(B, T, 1)
    return out, a


def _reference_forward(x, W, b, V):
    e = jnp.tanh(jnp.matmul(x, W) + b)          # (B, T, D)
    e = jnp.matmul(e, V)                        # (B, T, 1)
    a = jax.nn.softmax(e, axis=1)               # softmax over the sequence axis
    output = x * a
    return jnp.sum(output, axis=1), a


if __name__ == "__main__":
    # Pin matmul precision so the pure-JAX reference matches the HIGHEST-precision
    # dots inside the kernel at the 1e-5 tolerance.
    jax.config.update("jax_default_matmul_precision", "highest")

    # Small shapes consistent with the module's forward.
    B, T, F, DIM = 2, 8, 32, 64

    key = jax.random.PRNGKey(0)
    kx, kw, kv = jax.random.split(key, 3)

    x = jax.random.normal(kx, (B, T, F), dtype=jnp.float32)
    # Mirrors build(): W ~ randn, b = zeros, V ~ randn
    W = jax.random.normal(kw, (F, DIM), dtype=jnp.float32)
    b = jnp.zeros((T, DIM), dtype=jnp.float32)
    V = jax.random.normal(kv, (DIM, 1), dtype=jnp.float32)

    out, a = attention_forward(x, W, b, V)
    out = jax.block_until_ready(out)
    a = jax.block_until_ready(a)

    ref_out, ref_a = _reference_forward(x, W, b, V)
    assert out.shape == (B, F) and a.shape == (B, T, 1)
    assert jnp.allclose(out, ref_out, atol=1e-5, rtol=1e-5)
    assert jnp.allclose(a, ref_a, atol=1e-5, rtol=1e-5)

    print("KERNEL_OK")
</pallas_src>

<mosaic_0001>
module attributes {stable_mosaic.version = 11 : i64} {
  func.func @_attention_kernel(%arg0: i32, %arg1: memref<8x8x32xf32, #tpu.memory_space<vmem>>, %arg2: memref<32x64xf32, #tpu.memory_space<vmem>>, %arg3: memref<8x64xf32, #tpu.memory_space<vmem>>, %arg4: memref<1x64xf32, #tpu.memory_space<vmem>>, %arg5: memref<8x128xf32, #tpu.memory_space<vmem>>, %arg6: memref<8x128xf32, #tpu.memory_space<vmem>>) attributes {dimension_semantics = [#tpu.dimension_semantics<parallel>], iteration_bounds = array<i64: 1>, scalar_prefetch = 0 : i64, scratch_operands = 0 : i64, tpu.core_type = #tpu.core_type<tc>, window_params = [{transform_indices = @transform_0, window_bounds = array<i64: 8, 8, 32>}, {pipeline_mode = #tpu.pipeline_mode<synchronous>, transform_indices = @transform_1, window_bounds = array<i64: 32, 64>}, {pipeline_mode = #tpu.pipeline_mode<synchronous>, transform_indices = @transform_2, window_bounds = array<i64: 8, 64>}, {pipeline_mode = #tpu.pipeline_mode<synchronous>, transform_indices = @transform_3, window_bounds = array<i64: 1, 64>}, {transform_indices = @transform_4, window_bounds = array<i64: 8, 128>}, {transform_indices = @transform_5, window_bounds = array<i64: 8, 128>}]} {
    %c0 = arith.constant 0 : index
    %c0_0 = arith.constant 0 : index
    %c0_1 = arith.constant 0 : index
    %0 = vector.load %arg1[%c0, %c0_0, %c0_1] : memref<8x8x32xf32, #tpu.memory_space<vmem>>, vector<8x8x32xf32>
    %1 = vector.shape_cast %0 : vector<8x8x32xf32> to vector<64x32xf32>
    %c0_2 = arith.constant 0 : index
    %c0_3 = arith.constant 0 : index
    %2 = vector.load %arg2[%c0_2, %c0_3] : memref<32x64xf32, #tpu.memory_space<vmem>>, vector<32x64xf32>
    %cst = arith.constant dense<0.000000e+00> : vector<64x64xf32>
    %3 = tpu.matmul %1, %2, %cst {dimension_numbers = #tpu.dot_dimension_numbers<[1], [0], [0], [1], [0, 0, 1, 1], [], []>, precision = #tpu.contract_precision<fp32>} : vector<64x32xf32>, vector<32x64xf32>, vector<64x64xf32> -> vector<64x64xf32>
    %4 = vector.shape_cast %3 : vector<64x64xf32> to vector<8x8x64xf32>
    %c0_4 = arith.constant 0 : index
    %c0_5 = arith.constant 0 : index
    %5 = vector.load %arg3[%c0_4, %c0_5] : memref<8x64xf32, #tpu.memory_space<vmem>>, vector<8x64xf32>
    %6 = vector.shape_cast %5 : vector<8x64xf32> to vector<1x8x64xf32>
    %7 = vector.broadcast %6 : vector<1x8x64xf32> to vector<8x8x64xf32>
    %8 = arith.addf %4, %7 : vector<8x8x64xf32>
    %9 = math.tanh %8 : vector<8x8x64xf32>
    %c0_6 = arith.constant 0 : index
    %c0_7 = arith.constant 0 : index
    %10 = vector.load %arg4[%c0_6, %c0_7] : memref<1x64xf32, #tpu.memory_space<vmem>>, vector<1x64xf32>
    %11 = vector.shape_cast %10 : vector<1x64xf32> to vector<1x1x64xf32>
    %12 = vector.broadcast %11 : vector<1x1x64xf32> to vector<8x8x64xf32>
    %13 = arith.mulf %9, %12 : vector<8x8x64xf32>
    %cst_8 = arith.constant dense<0.000000e+00> : vector<8x8xf32>
    %14 = vector.multi_reduction <add>, %13, %cst_8 [2] : vector<8x8x64xf32> to vector<8x8xf32>
    %cst_9 = arith.constant dense<0xFF800000> : vector<8xf32>
    %15 = vector.multi_reduction <maximumf>, %14, %cst_9 [1] : vector<8x8xf32> to vector<8xf32>
    %16 = vector.shape_cast %15 : vector<8xf32> to vector<8x1xf32>
    %17 = vector.broadcast %16 : vector<8x1xf32> to vector<8x8xf32>
    %18 = arith.subf %14, %17 : vector<8x8xf32>
    %19 = math.exp %18 : vector<8x8xf32>
    %cst_10 = arith.constant dense<0.000000e+00> : vector<8xf32>
    %20 = vector.multi_reduction <add>, %19, %cst_10 [1] : vector<8x8xf32> to vector<8xf32>
    %21 = vector.shape_cast %20 : vector<8xf32> to vector<8x1xf32>
    %22 = vector.broadcast %21 : vector<8x1xf32> to vector<8x8xf32>
    %23 = arith.divf %19, %22 : vector<8x8xf32>
    %24 = vector.shape_cast %23 : vector<8x8xf32> to vector<8x8x1xf32>
    %25 = vector.broadcast %24 : vector<8x8x1xf32> to vector<8x8x32xf32>
    %26 = arith.mulf %0, %25 : vector<8x8x32xf32>
    %cst_11 = arith.constant dense<0.000000e+00> : vector<8x32xf32>
    %27 = vector.multi_reduction <add>, %26, %cst_11 [1] : vector<8x8x32xf32> to vector<8x32xf32>
    %cst_12 = arith.constant 0.000000e+00 : f32
    %28 = vector.broadcast %cst_12 : f32 to vector<8x96xf32>
    %29 = tpu.concatenate %27, %28 in 1 : vector<8x32xf32>, vector<8x96xf32> -> vector<8x128xf32>
    %cst_13 = arith.constant 0.000000e+00 : f32
    %30 = vector.broadcast %cst_13 : f32 to vector<8x120xf32>
    %31 = tpu.concatenate %23, %30 in 1 : vector<8x8xf32>, vector<8x120xf32> -> vector<8x128xf32>
    %c0_14 = arith.constant 0 : index
    %c0_15 = arith.constant 0 : index
    %32 = vector.load %arg5[%c0_14, %c0_15] : memref<8x128xf32, #tpu.memory_space<vmem>>, vector<8x128xf32>
    tpu.vector_store %arg5[%c0_14, %c0_15], %29 {strides = array<i32>} : memref<8x128xf32, #tpu.memory_space<vmem>>, vector<8x128xf32>,
    %c0_16 = arith.constant 0 : index
    %c0_17 = arith.constant 0 : index
    %33 = vector.load %arg6[%c0_16, %c0_17] : memref<8x128xf32, #tpu.memory_space<vmem>>, vector<8x128xf32>
    tpu.vector_store %arg6[%c0_16, %c0_17], %31 {strides = array<i32>} : memref<8x128xf32, #tpu.memory_space<vmem>>, vector<8x128xf32>,
    return
  }
  func.func @transform_0(%arg0: i32) -> (i32, i32, i32) {
    %c0_i32 = arith.constant 0 : i32
    %c0_i32_0 = arith.constant 0 : i32
    %c0_i32_1 = arith.constant 0 : i32
    return %arg0, %c0_i32, %c0_i32_0 : i32, i32, i32
  }
  func.func @transform_1(%arg0: i32) -> (i32, i32) {
    %c0_i32 = arith.constant 0 : i32
    %c0_i32_0 = arith.constant 0 : i32
    %c0_i32_1 = arith.constant 0 : i32
    return %c0_i32, %c0_i32_0 : i32, i32
  }
  func.func @transform_2(%arg0: i32) -> (i32, i32) {
    %c0_i32 = arith.constant 0 : i32
    %c0_i32_0 = arith.constant 0 : i32
    %c0_i32_1 = arith.constant 0 : i32
    return %c0_i32, %c0_i32_0 : i32, i32
  }
  func.func @transform_3(%arg0: i32) -> (i32, i32) {
    %c0_i32 = arith.constant 0 : i32
    %c0_i32_0 = arith.constant 0 : i32
    %c0_i32_1 = arith.constant 0 : i32
    return %c0_i32, %c0_i32_0 : i32, i32
  }
  func.func @transform_4(%arg0: i32) -> (i32, i32) {
    %c0_i32 = arith.constant 0 : i32
    %c0_i32_0 = arith.constant 0 : i32
    return %arg0, %c0_i32 : i32, i32
  }
  func.func @transform_5(%arg0: i32) -> (i32, i32) {
    %c0_i32 = arith.constant 0 : i32
    %c0_i32_0 = arith.constant 0 : i32
    return %arg0, %c0_i32 : i32, i32
  }
}

</mosaic_0001>

<bundles_post_ra>
// kernel: tpu_custom_call.1
= control target key start
LH: loop header
LB: loop body
LE: loop exit
PB: predicated region body
PF: predicated region fallthrough
CT: control target
= control target key end

     0   :  { %11 = vsyncpa [#allocation3], 0  ;;  %s2259_s0 = inlined_call_operand.hbm [shape: f32[8,8,32], index: 0, kind: input, shape index: {}]   ;;  %s2260_s1 = inlined_call_operand.hbm [shape: f32[32,64], index: 1, kind: input, shape index: {}]   ;;  %s2261_s2 = inlined_call_operand.hbm [shape: f32[8,64], index: 2, kind: input, shape index: {}]   ;;  %s2262_s3 = inlined_call_operand.vmem [shape: f32[1,64], index: 3, kind: input, shape index: {}]   ;;  %s2263_s4 = inlined_call_operand.hbm [shape: f32[8,128], index: 4, kind: output, shape index: {0}]   ;;  %s2264_s5 = inlined_call_operand.hbm [shape: f32[8,128], index: 5, kind: output, shape index: {1}]  }
   0x1   :  { %12 = vsyncpa [#allocation6], 0 }
   0x2   :  { %13 = vsyncpa [#allocation4], 0 }
   0x3   :  { %14 = vsyncpa [#allocation10], 0  ;;  %s1849_s18 = smov [#allocation5]   ;;  %s1850_s20 = smov [#allocation2]  }
   0x4   :  { %s32_s19 = sshll.u32 %s1849_s18, 4  ;;  %s20_s21 = sshll.u32 %s1850_s20, 4  ;;  %s33_s19 = int_to_ptr.vmem [resolvable:$true] %s32_s19  ;;  %s1887_s21 = int_to_ptr.vmem [resolvable:$true] %s20_s21 }
   0x5   :  { %s1731_s24 = scalar_lea.hbm %s2260_s1, 512 }
   0x6   :  { %p1732_p0 = scmp.ne.s32.totalorder %s2260_s1, %s1731_s24  ;;  %p1735_p1 = scmp.lt.u32.totalorder %s1731_s24, %s2260_s1 }
   0x8   :  { %p1737_p2 = pnand %p1735_p1, %p1732_p0 }
   0xa   :  { %1740 = shalt.err (!%p1737_p2)
}
   0xb   :  { %s1741_s29 = scalar_lea.vmem %s33_s19, 512  ;;  %p1746_p4 = scmp.lt.s32.totalorder %s33_s19, %s33_s19 }
   0xc   :  { %p1742_p3 = scmp.ne.s32.totalorder %s33_s19, %s1741_s29  ;;  %p1747_p5 = scmp.lt.s32.totalorder %s1741_s29, %s1741_s29 }
   0xe   :  { %p1748_p6 = por %p1747_p5, %p1746_p4 }
  0x10   :  { %p1749_p7 = pnand %p1748_p6, %p1742_p3 }
  0x12   :  { %1752 = shalt.err (!%p1749_p7)
}
  0x13   :  { %s1851_s30 = smov 128   ;;  %s1852_s6 = smov 8  }
  0x14   :  { %38 = dma.hbm_to_vmem [thread:$0]  %s2260_s1, 512, %s33_s19, [#allocation6], %s1851_s30, %s1851_s30, %s1852_s6  }
  0x15   :  { %s1753_s11 = scalar_lea.hbm %s2259_s0, 1024 }
  0x16   :  { %p1754_p8 = scmp.ne.s32.totalorder %s2259_s0, %s1753_s11  ;;  %p1757_p9 = scmp.lt.u32.totalorder %s1753_s11, %s2259_s0 }
  0x18   :  { %p1759_p10 = pnand %p1757_p9, %p1754_p8 }
  0x1a   :  { %1762 = shalt.err (!%p1759_p10)
}
  0x1b   :  { %s1763_s16 = scalar_lea.vmem %s1887_s21, 1024  ;;  %p1768_p12 = scmp.lt.s32.totalorder %s1887_s21, %s1887_s21 }
  0x1c   :  { %p1764_p11 = scmp.ne.s32.totalorder %s1887_s21, %s1763_s16  ;;  %p1769_p13 = scmp.lt.s32.totalorder %s1763_s16, %s1763_s16 }
  0x1e   :  { %p1770_p0 = por %p1769_p13, %p1768_p12 }
  0x20   :  { %p1771_p1 = pnand %p1770_p0, %p1764_p11 }
  0x22   :  { %1774 = shalt.err (!%p1771_p1)
}
  0x23   :  { %26 = dma.hbm_to_vmem [thread:$0]  %s2259_s0, 1024, %s1887_s21, [#allocation3], %s1851_s30, %s1851_s30, %s1852_s6  }
  0x24   :  { %s1853_s18 = smov [#allocation7]   ;;  %s1775_s23 = scalar_lea.hbm %s2261_s2, 128 }
  0x25   :  { %s45_s19 = sshll.u32 %s1853_s18, 4  ;;  %p1776_p2 = scmp.ne.s32.totalorder %s2261_s2, %s1775_s23  ;;  %s46_s19 = int_to_ptr.vmem [resolvable:$true] %s45_s19 }
  0x26   :  { %p1779_p3 = scmp.lt.u32.totalorder %s1775_s23, %s2261_s2 }
  0x28   :  { %p1781_p4 = pnand %p1779_p3, %p1776_p2 }
  0x2a   :  { %1784 = shalt.err (!%p1781_p4)
}
  0x2b   :  { %s1785_s28 = scalar_lea.vmem %s46_s19, 128  ;;  %p1790_p6 = scmp.lt.s32.totalorder %s46_s19, %s46_s19 }
  0x2c   :  { %p1786_p5 = scmp.ne.s32.totalorder %s46_s19, %s1785_s28  ;;  %p1791_p7 = scmp.lt.s32.totalorder %s1785_s28, %s1785_s28 }
  0x2e   :  { %p1792_p8 = por %p1791_p7, %p1790_p6 }
  0x30   :  { %p1793_p9 = pnand %p1792_p8, %p1786_p5 }
  0x32   :  { %1796 = shalt.err (!%p1793_p9)
}
  0x33   :  { %48 = dma.hbm_to_vmem [thread:$0]  %s2261_s2, 128, %s46_s19, [#allocation6]  }
  0x34   :  { %1841 = dma.done.wait [#allocation3], 1024  }
  0x35   :  { %1842 = vsyncadd [#allocation3], 4294966272 }
  0x36   :  { %1843 = dma.done.wait [#allocation6], 640  }
  0x37   :  { %1844 = vsyncadd [#allocation6], 4294966656  ;;  %vm72_vm0 = vcmask 261120   ;;  %v68_v0 = vld [vmem:[#allocation5] sm:$0xff]  ;;  %v69_v1 = vld [vmem:[#allocation5 + $0x8] sm:$0xff]  ;;  %vm915_vm1 = vcmask 523264  }
  0x38   :  { %v70_v2 = vld [vmem:[#allocation5 + $0x10] sm:$0xff]  ;;  %v98_v3 = vand.u32 4294901760, %v68_v0  ;;  %v101_v4 = vand.u32 4294901760, %v69_v1  ;;  %v1930_v5 = vld [vmem:[#allocation5 + $0x18] sm:$0xff]  ;;  %v1932_v7 = vld [vmem:[#allocation2] sm:$0xff]  ;;  %vm982_vm2 = vcmask 1041409  }
  0x39   :  { %v104_v6 = vand.u32 4294901760, %v70_v2  ;;  %v1934_v8 = vld [vmem:[#allocation2 + $0x8] sm:$0xff]  ;;  %v107_v9 = vand.u32 4294901760, %v1930_v5  ;;  %v74_v10 = vsel %vm72_vm0, %v1932_v7, 0  ;;  %v1941_v12 = vld [vmem:[#allocation2 + $0x10] sm:$0xff]  ;;  %v1943_v13 = vld [vmem:[#allocation2 + $0x18] sm:$0xff] }
  0x3a   :  { %v77_v11 = vsel %vm72_vm0, %v1934_v8, 0  ;;  %v1945_v14 = vpack.c.bf16 %v101_v4, %v98_v3  ;;  %v1947_v15 = vand.u32 4294901760, %v74_v10  ;;  %v1951_v17 = vsub.f32 %v68_v0, %v98_v3  ;;  %v1953_v18 = vld [vmem:[#allocation2 + $0x20] sm:$0xff]  ;;  %v1955_v19 = vld [vmem:[#allocation2 + $0x28] sm:$0xff]  ;;  %v2012_v48 = vld [vmem:[#allocation2 + $0x30] sm:$0xff] }
  0x3b   :  { %v1949_v16 = vand.u32 4294901760, %v77_v11  ;;  %v1959_v20 = vpack.c.bf16 %v107_v9, %v104_v6  ;;  %v1961_v21 = vsub.f32 %v69_v1, %v101_v4  ;;  %v80_v22 = vsel %vm72_vm0, %v1941_v12, 0  ;;  %v2020_v57 = vld [vmem:[#allocation2 + $0x38] sm:$0xff] }
  0x3c   :  { %v83_v23 = vsel %vm72_vm0, %v1943_v13, 0  ;;  %1586 = vmatprep.subr.bf16.mxu1 %v1945_v14  ;;  %1610 = vmatprep.subr.bf16.mxu0 %v1945_v14  ;;  %v1970_v24 = vsub.f32 %v74_v10, %v1947_v15  ;;  %v249_v26 = vand.u32 4294901760, %v1951_v17  ;;  %v1976_v27 = vand.u32 4294901760, %v80_v22 }
  0x3d   :  { %v1973_v25 = vsub.f32 %v77_v11, %v1949_v16  ;;  %1588 = vmatpush3.bf16.msra.mxu1 %v1945_v14  ;;  %1612 = vmatpush3.bf16.msra.mxu0 %v1945_v14  ;;  %v256_v28 = vand.u32 4294901760, %v1961_v21  ;;  %v1981_v29 = vand.u32 4294901760, %v83_v23  ;;  %v86_v30 = vsel %vm72_vm0, %v1953_v18, 0 }
  0x3e   :  { %v89_v31 = vsel %vm72_vm0, %v1955_v19, 0  ;;  %1590 = vmatprep.subr.bf16.mxu1 %v1959_v20  ;;  %1614 = vmatprep.subr.bf16.mxu0 %v1959_v20  ;;  %v168_v32 = vand.u32 4294901760, %v1970_v24  ;;  %v250_v34 = vsub.f32 %v1951_v17, %v249_v26  ;;  %v1993_v35 = vsub.f32 %v80_v22, %v1976_v27 }
  0x3f   :  { %v178_v33 = vand.u32 4294901760, %v1973_v25  ;;  %v257_v36 = vsub.f32 %v1961_v21, %v256_v28  ;;  %v1617_v37 = vpack.c.bf16 %v256_v28, %v249_v26  ;;  %v1997_v38 = vsub.f32 %v83_v23, %v1981_v29 }
  0x40   :  { %v1999_v39 = vand.u32 4294901760, %v86_v30  ;;  %v169_v40 = vsub.f32 %v1970_v24, %v168_v32  ;;  %1533 = vmatprep.mubr.f32.mxu0 %v168_v32  ;;  %v251_v42 = vand.u32 4294901760, %v250_v34  ;;  %v188_v43 = vand.u32 4294901760, %v1993_v35 }
  0x41   :  { %v179_v41 = vsub.f32 %v1973_v25, %v178_v33  ;;  %1592 = vmatpush3.bf16.msra.mxu1 %v1959_v20  ;;  %1616 = vmatpush3.bf16.msra.mxu0 %v1959_v20  ;;  %v258_v44 = vand.u32 4294901760, %v257_v36  ;;  %v198_v45 = vand.u32 4294901760, %v1997_v38  ;;  %v2010_v47 = vand.u32 4294901760, %v89_v31 }
  0x42   :  { %v2008_v46 = vsub.f32 %v86_v30, %v1999_v39  ;;  %v170_v49 = vand.u32 4294901760, %v169_v40  ;;  %1618 = vmatprep.subr.bf16.mxu0 %v1617_v37  ;;  %v189_v51 = vsub.f32 %v1993_v35, %v188_v43  ;;  %v262_v52 = vsub.f32 %v70_v2, %v104_v6 }
  0x43   :  { %v180_v50 = vand.u32 4294901760, %v179_v41  ;;  %v1593_v53 = vpack.c.bf16 %v258_v44, %v251_v42  ;;  %v199_v54 = vsub.f32 %v1997_v38, %v198_v45  ;;  %v2018_v56 = vsub.f32 %v89_v31, %v2010_v47 }
  0x44   :  { %v208_v55 = vand.u32 4294901760, %v2008_v46  ;;  %1473 = vmatprep.mubr.f32.mxu1 %v170_v49  ;;  %1534 = vmatmul.mubr.f32.vlgmr.msra.gmra.mrb[0].mxu0 %v178_v33  ;;  %v190_v58 = vand.u32 4294901760, %v189_v51  ;;  %v263_v59 = vand.u32 4294901760, %v262_v52  ;;  %v269_v60 = vsub.f32 %v1930_v5, %v107_v9 }
  0x45   :  { %v92_v61 = vsel %vm72_vm0, %v2012_v48, 0  ;;  %1474 = vmatmul.mubr.f32.vlgmr.msra.gmra.mrb[0].mxu1 %v180_v50  ;;  %1594 = vmatprep.subr.bf16.mxu1 %v1593_v53  ;;  %v200_v62 = vand.u32 4294901760, %v199_v54  ;;  %v218_v0 = vand.u32 4294901760, %v2018_v56  ;;  %v95_v4 = vsel %vm72_vm0, %v2020_v57, 0 }
  0x46   :  { %v209_v63 = vsub.f32 %v2008_v46, %v208_v55  ;;  %v2029_v1 = vand.u32 4294901760, %v92_v61  ;;  %1596 = vmatpush3.bf16.msra.mxu1 %v1593_v53  ;;  %1620 = vmatpush3.bf16.msra.mxu0 %v1617_v37  ;;  %v264_v2 = vsub.f32 %v262_v52, %v263_v59  ;;  %v270_v3 = vand.u32 4294901760, %v269_v60 }
  0x47   :  { %1476 = vmatprep.mubr.f32.mxu1 %v190_v58  ;;  %1536 = vmatprep.mubr.f32.mxu0 %v188_v43  ;;  %v219_v6 = vsub.f32 %v2018_v56, %v218_v0  ;;  %v2037_v10 = vand.u32 4294901760, %v95_v4  ;;  %v1601_v36 = vpack.c.bf16 %v1961_v21, %v1951_v17  ;;  %v1605_v42 = vpack.c.bf16 %v269_v60, %v262_v52 }
  0x48   :  { %v210_v5 = vand.u32 4294901760, %v209_v63  ;;  %v2035_v9 = vsub.f32 %v92_v61, %v2029_v1  ;;  %1537 = vmatmul.mubr.f32.gmra.mrb[2].mxu0 %v198_v45  ;;  %v265_v11 = vand.u32 4294901760, %v264_v2  ;;  %v271_v22 = vsub.f32 %v269_v60, %v270_v3 }
  0x49   :  { %v1621_v23 = vpack.c.bf16 %v270_v3, %v263_v59  ;;  %1477 = vmatmul.mubr.f32.gmra.mrb[2].mxu1 %v200_v62  ;;  %1539 = vmatprep.mubr.f32.mxu0 %v208_v55  ;;  %v220_v26 = vand.u32 4294901760, %v219_v6  ;;  %v237_v30 = vsub.f32 %v95_v4, %v2037_v10  ;;  %v1392_v62 = vld [vmem:[%s2262_s3] ss:$0 sm:$0xff]  ;;  %vm984_vm3 = vcmask 1042434   ;;  %s1855_s3 = smov [#allocation9]  }
  0x4a   :  { %v228_v28 = vand.u32 4294901760, %v2035_v9  ;;  %1479 = vmatprep.mubr.f32.mxu1 %v210_v5  ;;  %v272_v31 = vand.u32 4294901760, %v271_v22  ;;  %vm986_vm4 = vcmask 1043459   ;;  %vm988_vm5 = vcmask 1044484   ;;  %s1378_s30 = sshll.u32 %s1855_s3, 4  ;;  %s1379_s30 = int_to_ptr.vmem [resolvable:$true] %s1378_s30 }
  0x4b   :  { %1622 = vmatprep.subr.bf16.mxu0 %v1621_v23  ;;  %v238_v33 = vand.u32 4294901760, %v237_v30  ;;  %vm990_vm6 = vcmask 1045509   ;;  %vm992_vm7 = vcmask 1046534   ;;  %vm994_vm8 = vcmask 1047559   ;;  %s1797_s6 = scalar_lea.vmem %s1379_s30, 128  ;;  %p1802_p11 = scmp.lt.s32.totalorder %s1379_s30, %s1379_s30 }
  0x4c   :  { %1624 = vmatpush3.bf16.msra.mxu0 %v1621_v23  ;;  %v229_v32 = vsub.f32 %v2035_v9, %v228_v28  ;;  %v1597_v34 = vpack.c.bf16 %v272_v31, %v265_v11  ;;  %vm997_vm9 = vcmask 64512   ;;  %p1798_p10 = scmp.ne.s32.totalorder %s1379_s30, %s1797_s6  ;;  %p1803_p12 = scmp.lt.s32.totalorder %s1797_s6, %s1797_s6 }
  0x4d   :  { %1540 = vmatmul.mubr.f32.gmra.mrb[4].mxu0 %v218_v0  ;;  %1626 = vmatprep.subr.bf16.mxu0 %v1945_v14  ;;  %v239_v40 = vsub.f32 %v237_v30, %v238_v33 }
  0x4e   :  { %1480 = vmatmul.mubr.f32.gmra.mrb[4].mxu1 %v220_v26  ;;  %v230_v37 = vand.u32 4294901760, %v229_v32  ;;  %1542 = vmatprep.mubr.f32.mxu0 %v228_v28  ;;  %p1804_p13 = por %p1803_p12, %p1802_p11 }
  0x4f   :  { %1598 = vmatprep.subr.bf16.mxu1 %v1597_v34  ;;  %v240_v41 = vand.u32 4294901760, %v239_v40 }
  0x50   :  { %1600 = vmatpush3.bf16.msra.mxu1 %v1597_v34  ;;  %1482 = vmatprep.mubr.f32.mxu1 %v230_v37  ;;  %p1805_p0 = pnand %p1804_p13, %p1798_p10 }
  0x51   :  { %1543 = vmatmul.mubr.f32.gmra.mrb[6].mxu0 %v238_v33  ;;  %1602 = vmatprep.subr.bf16.mxu1 %v1601_v36 }
  0x52   :  { %1483 = vmatmul.mubr.f32.gmra.mrb[6].mxu1 %v240_v41  ;;  %1553 = vmatprep.mubr.f32.mxu0 %v1947_v15 }
  0x53   :  { %1493 = vmatprep.mubr.f32.mxu1 %v1947_v15 }
  0x55   :  { %1554 = vmatmul.mubr.f32.vlgmr.msra.gmra.mrb[0].mxu0 %v1949_v16 }
  0x56   :  { %1494 = vmatmul.mubr.f32.vlgmr.msra.gmra.mrb[0].mxu1 %v1949_v16  ;;  %1628 = vmatpush3.bf16.msra.mxu0 %v1945_v14 }
  0x57   :  { %1604 = vmatpush3.bf16.msra.mxu1 %v1601_v36  ;;  %1496 = vmatprep.mubr.f32.mxu1 %v1976_v27 }
  0x58   :  { %1556 = vmatprep.mubr.f32.mxu0 %v1976_v27  ;;  %1606 = vmatprep.subr.bf16.mxu1 %v1605_v42 }
  0x59   :  { %1557 = vmatmul.mubr.f32.gmra.mrb[2].mxu0 %v1981_v29  ;;  %1630 = vmatprep.subr.bf16.mxu0 %v1959_v20 }
  0x5a   :  { %1497 = vmatmul.mubr.f32.gmra.mrb[2].mxu1 %v1981_v29  ;;  %1559 = vmatprep.mubr.f32.mxu0 %v1999_v39 }
  0x5b   :  { %1499 = vmatprep.mubr.f32.mxu1 %v1999_v39  ;;  %1608 = vmatpush3.bf16.msra.mxu1 %v1605_v42 }
  0x5c   :  { %1632 = vmatpush3.bf16.msra.mxu0 %v1959_v20 }
  0x5d   :  { %1560 = vmatmul.mubr.f32.gmra.mrb[4].mxu0 %v2010_v47 }
  0x5e   :  { %1500 = vmatmul.mubr.f32.gmra.mrb[4].mxu1 %v2010_v47  ;;  %1562 = vmatprep.mubr.f32.mxu0 %v2029_v1 }
  0x5f   :  { %1502 = vmatprep.mubr.f32.mxu1 %v2029_v1 }
  0x61   :  { %1563 = vmatmul.mubr.f32.gmra.mrb[6].mxu0 %v2037_v10 }
  0x62   :  { %1503 = vmatmul.mubr.f32.gmra.mrb[6].mxu1 %v2037_v10  ;;  %1573 = vmatprep.mubr.f32.mxu0 %v1947_v15 }
  0x63   :  { %1513 = vmatprep.mubr.f32.mxu1 %v1970_v24 }
  0x65   :  { %1574 = vmatmul.mubr.f32.vlgmr.msra.gmra.mrb[0].mxu0 %v1949_v16  ;;  %v883_v16 = vld [vmem:[#allocation7] sm:$0xff] }
  0x66   :  { %1514 = vmatmul.mubr.f32.vlgmr.msra.gmra.mrb[0].mxu1 %v1973_v25  ;;  %1576 = vmatprep.mubr.f32.mxu0 %v1976_v27 }
  0x67   :  { %1516 = vmatprep.mubr.f32.mxu1 %v1993_v35 }
  0x69   :  { %1577 = vmatmul.mubr.f32.gmra.mrb[2].mxu0 %v1981_v29 }
  0x6a   :  { %1517 = vmatmul.mubr.f32.gmra.mrb[2].mxu1 %v1997_v38  ;;  %1579 = vmatprep.mubr.f32.mxu0 %v1999_v39 }
  0x6b   :  { %1519 = vmatprep.mubr.f32.mxu1 %v2008_v46 }
  0x6d   :  { %1580 = vmatmul.mubr.f32.gmra.mrb[4].mxu0 %v2010_v47 }
  0x6e   :  { %1520 = vmatmul.mubr.f32.gmra.mrb[4].mxu1 %v2018_v56  ;;  %1582 = vmatprep.mubr.f32.mxu0 %v2029_v1 }
  0x6f   :  { %1522 = vmatprep.mubr.f32.mxu1 %v2035_v9 }
  0x71   :  { %1583 = vmatmul.mubr.f32.gmra.mrb[6].mxu0 %v2037_v10 }
  0x72   :  { %1523 = vmatmul.mubr.f32.gmra.mrb[6].mxu1 %v237_v30 }
 0x138   :  { %v1575_v14 = vpop.f32.mrb[0].mxu0 }
 0x139   :  { %v1515_v15 = vpop.f32.mrb[0].mxu1  ;;  %v837_v17 = vpop.f32.mrb[1].mxu0 }
 0x13a   :  { %v1633_v20 = vadd.f32 %v1575_v14, %v1515_v15  ;;  %v455_v21 = vpop.f32.mrb[1].mxu1 }
 0x13b   :  { %v1634_v24 = vadd.f32 %v837_v17, %v455_v21 }
 0x13c   :  { %v885_v25 = vadd.f32 %v1633_v20, %v883_v16  ;;  %v1578_v27 = vpop.f32.mrb[2].mxu0 }
 0x13d   :  { %v884_v29 = vadd.f32 %v1634_v24, %v883_v16  ;;  %v1518_v35 = vpop.f32.mrb[2].mxu1  ;;  %v849_v38 = vpop.f32.mrb[3].mxu0 }
 0x13e   :  { %1683 = vtanh.f32 %v885_v25  ;;  %v1635_v39 = vadd.f32 %v1578_v27, %v1518_v35  ;;  %v469_v43 = vpop.f32.mrb[3].mxu1 }
 0x13f   :  { %1685 = vtanh.f32 %v884_v29  ;;  %v1636_v44 = vadd.f32 %v849_v38, %v469_v43 }
 0x140   :  { %v887_v45 = vadd.f32 %v1635_v39, %v883_v16  ;;  %v1581_v46 = vpop.f32.mrb[4].mxu0 }
 0x141   :  { %v886_v47 = vadd.f32 %v1636_v44, %v883_v16  ;;  %v1521_v49 = vpop.f32.mrb[4].mxu1  ;;  %v861_v50 = vpop.f32.mrb[5].mxu0 }
 0x142   :  { %1687 = vtanh.f32 %v887_v45  ;;  %v1637_v51 = vadd.f32 %v1581_v46, %v1521_v49  ;;  %v483_v52 = vpop.f32.mrb[5].mxu1 }
 0x143   :  { %1689 = vtanh.f32 %v886_v47  ;;  %v1638_v53 = vadd.f32 %v861_v50, %v483_v52 }
 0x144   :  { %v889_v54 = vadd.f32 %v1637_v51, %v883_v16  ;;  %v1584_v55 = vpop.f32.mrb[6].mxu0 }
 0x145   :  { %v888_v56 = vadd.f32 %v1638_v53, %v883_v16  ;;  %v1524_v58 = vpop.f32.mrb[6].mxu1  ;;  %v873_v59 = vpop.f32.mrb[7].mxu0 }
 0x146   :  { %1691 = vtanh.f32 %v889_v54  ;;  %v1639_v60 = vadd.f32 %v1584_v55, %v1524_v58  ;;  %v497_v61 = vpop.f32.mrb[7].mxu1 }
 0x147   :  { %1693 = vtanh.f32 %v888_v56  ;;  %v1640_v63 = vadd.f32 %v873_v59, %v497_v61 }
 0x148   :  { %v1684_v0 = vpop.eup %1683  ;;  %v891_v1 = vadd.f32 %v1639_v60, %v883_v16 }
 0x149   :  { %v1686_v2 = vpop.eup %1685  ;;  %v890_v3 = vadd.f32 %v1640_v63, %v883_v16  ;;  %v908_v4 = vmul.f32 %v1684_v0, %v1392_v62  ;;  %v948_v16 = vlaneseq }
 0x14a   :  { %1695 = vtanh.f32 %v891_v1  ;;  %v907_v6 = vmul.f32 %v1686_v2, %v1392_v62 }
 0x14b   :  { %1697 = vtanh.f32 %v890_v3  ;;  %v919_v5 = vsel %vm915_vm1, %v908_v4, 0.0  ;;  %v949_v17 = vand.u32 127, %v948_v16  ;;  %v2090_v20 = vshrl.u32 %v948_v16, 7 }
 0x14c   :  { %v1688_v9 = vpop.eup %1687  ;;  %920 = vadd.xlane.f32.xlu0 %v919_v5  ;;  %v916_v22 = vsel %vm915_vm1, %v907_v6, 0.0 }
 0x14d   :  { %v1690_v10 = vpop.eup %1689  ;;  %v910_v11 = vmul.f32 %v1688_v9, %v1392_v62  ;;  %v2093_v24 = vsub.s32 %v949_v17, %v2090_v20  ;;  %v1004_v63 = vsub.s32 0, %v2090_v20  ;;  %v1008_v0 = vsub.s32 1, %v2090_v20 }
 0x14e   :  { %v909_v26 = vmul.f32 %v1690_v10, %v1392_v62  ;;  %v1012_v1 = vsub.s32 2, %v2090_v20  ;;  %v1016_v2 = vsub.s32 3, %v2090_v20  ;;  %v1020_v9 = vsub.s32 4, %v2090_v20 }
 0x14f   :  { %v925_v23 = vsel %vm915_vm1, %v910_v11, 0.0 }
 0x150   :  { %v1692_v28 = vpop.eup %1691  ;;  %917 = vadd.xlane.f32.xlu0 %v916_v22  ;;  %926 = vadd.xlane.f32.xlu1 %v925_v23  ;;  %v922_v32 = vsel %vm915_vm1, %v909_v26, 0.0 }
 0x151   :  { %v1694_v30 = vpop.eup %1693  ;;  %v912_v33 = vmul.f32 %v1692_v28, %v1392_v62 }
 0x152   :  { %v911_v31 = vmul.f32 %v1694_v30, %v1392_v62  ;;  %v1024_v30 = vsub.s32 5, %v2090_v20 }
 0x153   :  { %v931_v41 = vsel %vm915_vm1, %v912_v33, 0.0 }
 0x154   :  { %v1696_v34 = vpop.eup %1695  ;;  %923 = vadd.xlane.f32.xlu1 %v922_v32  ;;  %v928_v36 = vsel %vm915_vm1, %v911_v31, 0.0 }
 0x155   :  { %v1698_v37 = vpop.eup %1697  ;;  %929 = vadd.xlane.f32.xlu0 %v928_v36  ;;  %v914_v42 = vmul.f32 %v1696_v34, %v1392_v62  ;;  %v1028_v34 = vsub.s32 6, %v2090_v20 }
 0x156   :  { %v913_v40 = vmul.f32 %v1698_v37, %v1392_v62  ;;  %v1854_v62 = vmov 0  }
 0x157   :  { %v937_v15 = vsel %vm915_vm1, %v914_v42, 0.0  ;;  %1682 = vset.pattern.permute.xlu0 %v1854_v62  ;;  %1681 = vset.pattern.permute.xlu1 %v1854_v62 }
 0x158   :  { %932 = vadd.xlane.f32.xlu1 %v931_v41  ;;  %v934_v14 = vsel %vm915_vm1, %v913_v40, 0.0  ;;  %v1032_v41 = vsub.s32 7, %v2090_v20 }
 0x159   :  { %935 = vadd.xlane.f32.xlu0 %v934_v14 }
 0x15c   :  { %938 = vadd.xlane.f32.xlu1 %v937_v15 }
 0x1d9   :  { %v921_v21 = vpop.xlane.xlu0 %920 }
 0x1da   :  { %v957_v35 = vrot.slane %v921_v21, %v2093_v24 }
 0x1dd   :  { %v918_v25 = vpop.xlane.xlu0 %917  ;;  %v927_v27 = vpop.xlane.xlu1 %926 }
 0x1de   :  { %v953_v29 = vrot.slane %v918_v25, %v2093_v24  ;;  %v965_v45 = vrot.slane %v927_v27, %v2093_v24 }
 0x1e0   :  { %v983_v44 = vsel %vm982_vm2, %v957_v35, %v953_v29 }
 0x1e1   :  { %v924_v38 = vpop.xlane.xlu1 %923 }
 0x1e2   :  { %v961_v39 = vrot.slane %v924_v38, %v2093_v24  ;;  %v930_v43 = vpop.xlane.xlu0 %929 }
 0x1e3   :  { %v969_v46 = vrot.slane %v930_v43, %v2093_v24 }
 0x1e4   :  { %v985_v47 = vsel %vm984_vm3, %v961_v39, %v983_v44 }
 0x1e5   :  { %v987_v49 = vsel %vm986_vm4, %v965_v45, %v985_v47  ;;  %v933_v50 = vpop.xlane.xlu1 %932 }
 0x1e6   :  { %v989_v51 = vsel %vm988_vm5, %v969_v46, %v987_v49  ;;  %v973_v52 = vrot.slane %v933_v50, %v2093_v24  ;;  %v936_v53 = vpop.xlane.xlu0 %935 }
 0x1e7   :  { %v977_v54 = vrot.slane %v936_v53, %v2093_v24 }
 0x1e8   :  { %v991_v55 = vsel %vm990_vm6, %v973_v52, %v989_v51 }
 0x1e9   :  { %v939_v56 = vpop.xlane.xlu1 %938  ;;  %v993_v59 = vsel %vm992_vm7, %v977_v54, %v991_v55 }
 0x1ea   :  { %v981_v58 = vrot.slane %v939_v56, %v2093_v24 }
 0x1ec   :  { %v995_v60 = vsel %vm994_vm8, %v981_v58, %v993_v59 }
 0x1ed   :  { %v998_v61 = vsel %vm997_vm9, %v995_v60, -inf }
 0x1ee   :  { %999 = vmax.xlane.f32.xlu0 %v998_v61 }
 0x27b   :  { %v1000_v3 = vpop.xlane.xlu0 %999 }
 0x27c   :  { %v1005_v4 = vrot.slane %v1000_v3, %v1004_v63  ;;  %v1009_v5 = vrot.slane %v1000_v3, %v1008_v0  ;;  %v1013_v6 = vrot.slane %v1000_v3, %v1012_v1  ;;  %v1017_v10 = vrot.slane %v1000_v3, %v1016_v2 }
 0x27d   :  { %v1021_v31 = vrot.slane %v1000_v3, %v1020_v9  ;;  %v1025_v36 = vrot.slane %v1000_v3, %v1024_v30  ;;  %v1029_v42 = vrot.slane %v1000_v3, %v1028_v34 }
 0x27e   :  { %v1042_v11 = vsub.f32 %v918_v25, %v1005_v4  ;;  %v1043_v22 = vsub.f32 %v921_v21, %v1009_v5  ;;  %v1044_v23 = vsub.f32 %v924_v38, %v1013_v6  ;;  %v1045_v32 = vsub.f32 %v927_v27, %v1017_v10 }
 0x27f   :  { %v1046_v37 = vsub.f32 %v930_v43, %v1021_v31  ;;  %v1047_v14 = vsub.f32 %v933_v50, %v1025_v36  ;;  %v1033_v21 = vrot.slane %v1000_v3, %v1032_v41  ;;  %v1048_v25 = vsub.f32 %v936_v53, %v1029_v42 }
 0x280   :  { %v1050_v26 = vmul.f32 1.442695, %v1042_v11  ;;  %v1052_v28 = vmul.f32 1.442695, %v1043_v22  ;;  %v1054_v33 = vmul.f32 1.442695, %v1044_v23 }
 0x281   :  { %v1056_v40 = vmul.f32 1.442695, %v1045_v32  ;;  %v1058_v15 = vmul.f32 1.442695, %v1046_v37  ;;  %v1060_v27 = vmul.f32 1.442695, %v1047_v14  ;;  %v1049_v35 = vsub.f32 %v939_v56, %v1033_v21 }
 0x282   :  { %1699 = vpow2.f32 %v1050_v26  ;;  %v1062_v38 = vmul.f32 1.442695, %v1048_v25 }
 0x283   :  { %1701 = vpow2.f32 %v1052_v28  ;;  %v1064_v43 = vmul.f32 1.442695, %v1049_v35 }
 0x284   :  { %1703 = vpow2.f32 %v1054_v33 }
 0x285   :  { %1705 = vpow2.f32 %v1056_v40 }
 0x286   :  { %1707 = vpow2.f32 %v1058_v15 }
 0x287   :  { %1709 = vpow2.f32 %v1060_v27 }
 0x288   :  { %1711 = vpow2.f32 %v1062_v38 }
 0x289   :  { %1713 = vpow2.f32 %v1064_v43 }
 0x28c   :  { %v1700_v16 = vpop.eup %1699 }
 0x28d   :  { %v2133_v17 = vpop.eup %1701  ;;  %1075 = vperm.xlu1 %1681, %v1700_v16  }
 0x28e   :  { %1078 = vperm.xlu0 %1682, %v2133_v17   ;;  %v2138_v29 = vpop.eup %1703 }
 0x28f   :  { %v2141_v39 = vpop.eup %1705 }
 0x290   :  { %v2144_v44 = vpop.eup %1707 }
 0x291   :  { %1081 = vperm.xlu1 %1681, %v2138_v29   ;;  %v2147_v45 = vpop.eup %1709 }
 0x292   :  { %v2150_v46 = vpop.eup %1711 }
 0x293   :  { %v2153_v47 = vpop.eup %1713 }
 0x295   :  { %1084 = vperm.xlu1 %1681, %v2141_v39  }
 0x299   :  { %1087 = vperm.xlu1 %1681, %v2144_v44  }
 0x29d   :  { %1090 = vperm.xlu1 %1681, %v2147_v45  }
 0x2a1   :  { %1093 = vperm.xlu1 %1681, %v2150_v46  }
 0x2a5   :  { %1096 = vperm.xlu1 %1681, %v2153_v47  }
 0x30c   :  { %v1076_v49 = vpop.permute.xlu1 %1075 }
 0x30d   :  { %v1079_v53 = vpop.permute.xlu0 %1078  ;;  %v1101_v56 = vrot.slane %v1076_v49, %v2093_v24 }
 0x30e   :  { %v1105_v55 = vrot.slane %v1079_v53, %v2093_v24 }
 0x310   :  { %v1082_v50 = vpop.permute.xlu1 %1081  ;;  %v1130_v62 = vsel %vm982_vm2, %v1105_v55, %v1101_v56 }
 0x311   :  { %v1109_v58 = vrot.slane %v1082_v50, %v2093_v24 }
 0x313   :  { %v1131_v4 = vsel %vm984_vm3, %v1109_v58, %v1130_v62 }
 0x314   :  { %v1085_v51 = vpop.permute.xlu1 %1084 }
 0x315   :  { %v1113_v59 = vrot.slane %v1085_v51, %v2093_v24 }
 0x317   :  { %v1132_v6 = vsel %vm986_vm4, %v1113_v59, %v1131_v4 }
 0x318   :  { %v1088_v52 = vpop.permute.xlu1 %1087 }
 0x319   :  { %v1117_v60 = vrot.slane %v1088_v52, %v2093_v24 }
 0x31b   :  { %v1133_v10 = vsel %vm988_vm5, %v1117_v60, %v1132_v6 }
 0x31c   :  { %v1091_v54 = vpop.permute.xlu1 %1090 }
 0x31d   :  { %v1121_v3 = vrot.slane %v1091_v54, %v2093_v24 }
 0x31f   :  { %v1134_v22 = vsel %vm990_vm6, %v1121_v3, %v1133_v10 }
 0x320   :  { %v1094_v61 = vpop.permute.xlu1 %1093 }
 0x321   :  { %v1125_v5 = vrot.slane %v1094_v61, %v2093_v24 }
 0x323   :  { %v1135_v26 = vsel %vm992_vm7, %v1125_v5, %v1134_v22 }
 0x324   :  { %v1097_v11 = vpop.permute.xlu1 %1096 }
 0x325   :  { %v1129_v23 = vrot.slane %v1097_v11, %v2093_v24 }
 0x327   :  { %v1136_v28 = vsel %vm994_vm8, %v1129_v23, %v1135_v26 }
 0x328   :  { %v1138_v31 = vsel %vm997_vm9, %v1136_v28, 0.0 }
 0x329   :  { %1139 = vadd.xlane.f32.xlu1 %v1138_v31 }
 0x3b6   :  { %v1140_v32 = vpop.xlane.xlu1 %1139 }
 0x3b7   :  { %v1145_v33 = vrot.slane %v1140_v32, %v1004_v63  ;;  %v1149_v36 = vrot.slane %v1140_v32, %v1008_v0  ;;  %v1153_v37 = vrot.slane %v1140_v32, %v1012_v1  ;;  %v1157_v40 = vrot.slane %v1140_v32, %v1016_v2 }
 0x3b8   :  { %v1161_v14 = vrot.slane %v1140_v32, %v1020_v9  ;;  %v1165_v63 = vrot.slane %v1140_v32, %v1024_v30  ;;  %v1169_v1 = vrot.slane %v1140_v32, %v1028_v34  ;;  %v1173_v9 = vrot.slane %v1140_v32, %v1032_v41 }
 0x3b9   :  { %1715 = vrcp.f32 %v1145_v33 }
 0x3ba   :  { %1717 = vrcp.f32 %v1149_v36 }
 0x3bb   :  { %1719 = vrcp.f32 %v1153_v37 }
 0x3bc   :  { %1721 = vrcp.f32 %v1157_v40 }
 0x3bd   :  { %1723 = vrcp.f32 %v1161_v14 }
 0x3be   :  { %1725 = vrcp.f32 %v1165_v63 }
 0x3bf   :  { %1727 = vrcp.f32 %v1169_v1 }
 0x3c0   :  { %1729 = vrcp.f32 %v1173_v9 }
 0x3c3   :  { %v1716_v42 = vpop.eup %1715 }
 0x3c4   :  { %v1183_v15 = vmul.f32 %v1716_v42, %v1700_v16  ;;  %v1718_v21 = vpop.eup %1717 }
 0x3c5   :  { %v1185_v0 = vmul.f32 %v1718_v21, %v2133_v17  ;;  %v1720_v25 = vpop.eup %1719 }
 0x3c6   :  { %1200 = vperm.xlu0 %1682, %v1183_v15   ;;  %v1187_v2 = vmul.f32 %v1720_v25, %v2138_v29  ;;  %v1722_v27 = vpop.eup %1721 }
 0x3c7   :  { %v1189_v16 = vmul.f32 %v1722_v27, %v2141_v39  ;;  %v1724_v35 = vpop.eup %1723 }
 0x3c8   :  { %v1191_v30 = vmul.f32 %v1724_v35, %v2144_v44  ;;  %v1726_v17 = vpop.eup %1725 }
 0x3c9   :  { %v1193_v38 = vmul.f32 %v1726_v17, %v2147_v45  ;;  %v1728_v34 = vpop.eup %1727 }
 0x3ca   :  { %1205 = vperm.xlu0 %1682, %v1185_v0   ;;  %v1195_v29 = vmul.f32 %v1728_v34, %v2150_v46  ;;  %v1730_v43 = vpop.eup %1729 }
 0x3cb   :  { %v1197_v20 = vmul.f32 %v1730_v43, %v2153_v47 }
 0x3ce   :  { %1210 = vperm.xlu0 %1682, %v1187_v2  }
 0x3d2   :  { %1215 = vperm.xlu0 %1682, %v1189_v16  }
 0x3d6   :  { %1220 = vperm.xlu0 %1682, %v1191_v30  }
 0x3da   :  { %1225 = vperm.xlu0 %1682, %v1193_v38  }
 0x3de   :  { %1230 = vperm.xlu0 %1682, %v1195_v29  }
 0x3e2   :  { %1235 = vperm.xlu0 %1682, %v1197_v20  }
 0x445   :  { %v1201_v41 = vpop.permute.xlu0 %1200 }
 0x446   :  { %v1238_v50 = vmul.f32 %v1201_v41, %v1932_v7  ;;  %v1322_v10 = vrot.slane %v1201_v41, %v2093_v24 }
 0x448   :  { %v1246_v52 = vsel %vm72_vm0, %v1238_v50, 0.0 }
 0x449   :  { %v1206_v39 = vpop.permute.xlu0 %1205  ;;  %v1247_v55 = vrot.slane %v1246_v52, 4 }
 0x44a   :  { %v1239_v49 = vmul.f32 %v1206_v39, %v1934_v8  ;;  %v1326_v6 = vrot.slane %v1206_v39, %v2093_v24 }
 0x44c   :  { %v1253_v45 = vsel %vm72_vm0, %v1239_v49, 0.0  ;;  %v1351_v40 = vsel %vm982_vm2, %v1326_v6, %v1322_v10 }
 0x44d   :  { %v1211_v44 = vpop.permute.xlu0 %1210  ;;  %v1254_v47 = vrot.slane %v1253_v45, 4 }
 0x44e   :  { %v1240_v51 = vmul.f32 %v1211_v44, %v1941_v12  ;;  %v1248_v12 = vadd.f32 %v1247_v55, %v1246_v52  ;;  %v1330_v22 = vrot.slane %v1211_v44, %v2093_v24 }
 0x44f   :  { %v1255_v60 = vadd.f32 %v1254_v47, %v1253_v45 }
 0x450   :  { %v1260_v46 = vsel %vm72_vm0, %v1240_v51, 0.0  ;;  %v1249_v26 = vrot.slane %v1248_v12, 2  ;;  %v1352_v21 = vsel %vm984_vm3, %v1330_v22, %v1351_v40 }
 0x451   :  { %v1216_v53 = vpop.permute.xlu0 %1215  ;;  %v1261_v56 = vrot.slane %v1260_v46, 4  ;;  %v1256_v11 = vrot.slane %v1255_v60, 2 }
 0x452   :  { %v1241_v54 = vmul.f32 %v1216_v53, %v1943_v13  ;;  %v1334_v28 = vrot.slane %v1216_v53, %v2093_v24  ;;  %v1250_v25 = vadd.f32 %v1249_v26, %v1248_v12 }
 0x453   :  { %v1262_v61 = vadd.f32 %v1261_v56, %v1260_v46  ;;  %v1257_v15 = vadd.f32 %v1256_v11, %v1255_v60 }
 0x454   :  { %v1267_v58 = vsel %vm72_vm0, %v1241_v54, 0.0  ;;  %v1353_v2 = vsel %vm986_vm4, %v1334_v28, %v1352_v21  ;;  %v1251_v51 = vrot.slane %v1250_v25, 1 }
 0x455   :  { %v1268_v8 = vrot.slane %v1267_v58, 4  ;;  %v1221_v59 = vpop.permute.xlu0 %1220  ;;  %v1258_v43 = vrot.slane %v1257_v15, 1 }
 0x456   :  { %v1242_v7 = vmul.f32 %v1221_v59, %v1953_v18  ;;  %v1263_v18 = vrot.slane %v1262_v61, 2  ;;  %v1338_v33 = vrot.slane %v1221_v59, %v2093_v24 }
 0x457   :  { %v1269_v3 = vadd.f32 %v1268_v8, %v1267_v58  ;;  %v1259_v53 = vadd.f32 %v1258_v43, %v1257_v15 }
 0x458   :  { %v1274_v62 = vsel %vm72_vm0, %v1242_v7, 0.0  ;;  %v1264_v1 = vadd.f32 %v1263_v18, %v1262_v61  ;;  %v1354_v16 = vsel %vm988_vm5, %v1338_v33, %v1353_v2 }
 0x459   :  { %v1275_v4 = vrot.slane %v1274_v62, 4  ;;  %v1226_v5 = vpop.permute.xlu0 %1225  ;;  %v1270_v32 = vrot.slane %v1269_v3, 2 }
 0x45a   :  { %v1243_v13 = vmul.f32 %v1226_v5, %v1955_v19  ;;  %v1342_v42 = vrot.slane %v1226_v5, %v2093_v24  ;;  %v1265_v49 = vrot.slane %v1264_v1, 1 }
 0x45b   :  { %v1276_v23 = vadd.f32 %v1275_v4, %v1274_v62  ;;  %v1271_v9 = vadd.f32 %v1270_v32, %v1269_v3 }
 0x45c   :  { %v1281_v31 = vsel %vm72_vm0, %v1243_v13, 0.0  ;;  %v1266_v56 = vadd.f32 %v1265_v49, %v1264_v1 }
 0x45d   :  { %v1282_v36 = vrot.slane %v1281_v31, 4  ;;  %v1231_v37 = vpop.permute.xlu0 %1230  ;;  %v1277_v19 = vrot.slane %v1276_v23, 2  ;;  %v1272_v45 = vrot.slane %v1271_v9, 1 }
 0x45e   :  { %v1244_v14 = vmul.f32 %v1231_v37, %v2012_v48  ;;  %v1346_v0 = vrot.slane %v1231_v37, %v2093_v24  ;;  %v1355_v48 = vsel %vm990_vm6, %v1342_v42, %v1354_v16 }
 0x45f   :  { %v1283_v63 = vadd.f32 %v1282_v36, %v1281_v31  ;;  %v1278_v38 = vadd.f32 %v1277_v19, %v1276_v23 }
 0x460   :  { %v1288_v27 = vsel %vm72_vm0, %v1244_v14, 0.0  ;;  %v1356_v39 = vsel %vm992_vm7, %v1346_v0, %v1355_v48 }
 0x461   :  { %v1284_v35 = vrot.slane %v1283_v63, 2  ;;  %v1289_v30 = vrot.slane %v1288_v27, 4  ;;  %v1236_v17 = vpop.permute.xlu0 %1235 }
 0x462   :  { %v1245_v34 = vmul.f32 %v1236_v17, %v2020_v57  ;;  %v1350_v29 = vrot.slane %v1236_v17, %v2093_v24  ;;  %v1279_v57 = vrot.slane %v1278_v38, 1 }
 0x463   :  { %v1285_v20 = vadd.f32 %v1284_v35, %v1283_v63  ;;  %v1290_v41 = vadd.f32 %v1289_v30, %v1288_v27 }
 0x464   :  { %v1295_v50 = vsel %vm72_vm0, %v1245_v34, 0.0  ;;  %v1357_v44 = vsel %vm994_vm8, %v1350_v29, %v1356_v39 }
 0x465   :  { %v1291_v52 = vrot.slane %v1290_v41, 2  ;;  %v1296_v46 = vrot.slane %v1295_v50, 4  ;;  %v1359_v24 = vsel %vm997_vm9, %v1357_v44, 0.0  ;;  %v1286_v54 = vrot.slane %v1285_v20, 1 }
 0x466   :  { %1361 = vst [vmem:[#allocation9] sm:$0xff] %v1359_v24 }
 0x467   :  { %v1292_v47 = vadd.f32 %v1291_v52, %v1290_v41  ;;  %v1297_v55 = vadd.f32 %v1296_v46, %v1295_v50 }
 0x468   :  { %1808 = shalt.err (!%p1805_p0)
}
 0x469   :  { %s1809_s9 = scalar_lea.hbm %s2264_s5, 128 }
 0x46a   :  { %p1810_p1 = scmp.ne.s32.totalorder %s2264_s5, %s1809_s9  ;;  %p1813_p2 = scmp.lt.u32.totalorder %s1809_s9, %s2264_s5 }
 0x46c   :  { %p1815_p3 = pnand %p1813_p2, %p1810_p1 }
 0x46e   :  { %1818 = shalt.err (!%p1815_p3)
}
 0x46f   :  { %1381 = dma.vmem_to_hbm [thread:$0]  %s1379_s30, 128, %s2264_s5, [#allocation10]   ;;  %v1252_v58 = vadd.f32 %v1251_v51, %v1250_v25  ;;  %v1273_v8 = vadd.f32 %v1272_v45, %v1271_v9  ;;  %v1293_v59 = vrot.slane %v1292_v47, 1  ;;  %v1298_v7 = vrot.slane %v1297_v55, 2 }
 0x470   :  { %v1280_v60 = vadd.f32 %v1279_v57, %v1278_v38  ;;  %v1287_v61 = vadd.f32 %v1286_v54, %v1285_v20  ;;  %s1856_s16 = smov [#allocation8]  }
 0x471   :  { %v1310_v12 = vsel %vm982_vm2, %v1259_v53, %v1252_v58  ;;  %v1299_v62 = vadd.f32 %v1298_v7, %v1297_v55  ;;  %v1294_v4 = vadd.f32 %v1293_v59, %v1292_v47  ;;  %s1368_s1 = sshll.u32 %s1856_s16, 4  ;;  %s1369_s1 = int_to_ptr.vmem [resolvable:$true] %s1368_s1 }
 0x472   :  { %v1311_v3 = vsel %vm984_vm3, %v1266_v56, %v1310_v12  ;;  %s1819_s5 = scalar_lea.vmem %s1369_s1, 128  ;;  %p1824_p5 = scmp.lt.s32.totalorder %s1369_s1, %s1369_s1 }
 0x473   :  { %v1300_v5 = vrot.slane %v1299_v62, 1  ;;  %v1312_v6 = vsel %vm986_vm4, %v1273_v8, %v1311_v3  ;;  %p1820_p4 = scmp.ne.s32.totalorder %s1369_s1, %s1819_s5  ;;  %p1825_p6 = scmp.lt.s32.totalorder %s1819_s5, %s1819_s5 }
 0x474   :  { %v1313_v13 = vsel %vm988_vm5, %v1280_v60, %v1312_v6 }
 0x475   :  { %v1301_v10 = vadd.f32 %v1300_v5, %v1299_v62  ;;  %v1314_v11 = vsel %vm990_vm6, %v1287_v61, %v1313_v13  ;;  %p1826_p7 = por %p1825_p6, %p1824_p5 }
 0x476   :  { %v1315_v22 = vsel %vm992_vm7, %v1294_v4, %v1314_v11 }
 0x477   :  { %v1316_v23 = vsel %vm994_vm8, %v1301_v10, %v1315_v22  ;;  %p1827_p8 = pnand %p1826_p7, %p1820_p4 }
 0x478   :  { %v1318_v26 = vsel %vm72_vm0, %v1316_v23, 0.0 }
 0x479   :  { %1360 = vst [vmem:[#allocation8] sm:$0xff] %v1318_v26 }
 0x47a   :  { %1830 = shalt.err (!%p1827_p8)
}
 0x47b   :  { %s1831_s19 = scalar_lea.hbm %s2263_s4, 128 }
 0x47c   :  { %p1832_p9 = scmp.ne.s32.totalorder %s2263_s4, %s1831_s19  ;;  %p1835_p10 = scmp.lt.u32.totalorder %s1831_s19, %s2263_s4 }
 0x47e   :  { %p1837_p11 = pnand %p1835_p10, %p1832_p9 }
 0x480   :  { %1840 = shalt.err (!%p1837_p11)
}
 0x481   :  { %1371 = dma.vmem_to_hbm [thread:$0]  %s1369_s1, 128, %s2263_s4, [#allocation4]  }
 0x482   :  { %1845 = dma.done.wait [#allocation4], 128  }
 0x483   :  { %1846 = vsyncadd [#allocation4], 4294967168 }
 0x484   :  { %1847 = dma.done.wait [#allocation10], 128  }
 0x485   :  { %1848 = vsyncadd [#allocation10], 4294967168 }
 0x486   :  { %1388 = vsyncpa [#allocation3], 1 }
 0x487   :  { %1389 = vsyncpa [#allocation6], 1 }
 0x488   :  { %1390 = vsyncpa [#allocation4], 1 }
 0x489   :  { %1391 = vsyncpa [#allocation10], 1 }

</bundles_post_ra>
